<compile_context>
chip_gen: v5e
topology: v5e:2x2
jax: 0.10.0
libtpu: 0.0.40
codegen_flags: <defaults>
</compile_context>

<pallas_src>
import math
import functools

import jax
import jax.numpy as jnp
import numpy as np
from jax import lax
from jax.experimental import pallas as pl
from jax.experimental.pallas import tpu as pltpu


def make_positional_encoding_table(max_len, d_model, dtype=jnp.float32):
    """Deterministic `pe` buffer, identical math to the PyTorch __init__."""
    position = jnp.arange(max_len, dtype=jnp.float32)[:, None]                # (max_len, 1)
    div_term = jnp.exp(
        jnp.arange(0, d_model, 2, dtype=jnp.float32) * (-math.log(10000.0) / d_model)
    )                                                                          # (d_model/2,)
    pe = jnp.zeros((max_len, d_model), dtype=jnp.float32)
    pe = pe.at[:, 0::2].set(jnp.sin(position * div_term))
    pe = pe.at[:, 1::2].set(jnp.cos(position * div_term))
    return pe.astype(dtype)                                                    # (max_len, d_model)


def _mix32(v):
    """lowbias32-style integer mixer on uint32 (pure jnp ops, lowers everywhere)."""
    v = v ^ (v >> 16)
    v = v * jnp.uint32(0x7FEB352D)
    v = v ^ (v >> 15)
    v = v * jnp.uint32(0x846CA68B)
    v = v ^ (v >> 16)
    return v


def _wrap_i32(v):
    """Wrap a Python int to two's-complement int32 (for scalar hash constants)."""
    v &= 0xFFFFFFFF
    return v - (1 << 32) if v >= (1 << 31) else v


def _pe_dropout_kernel(seed_ref, x_ref, pe_ref, o_ref, *, p, training, ts, b, bd):
    # x_ref, o_ref: (TS, B*D) lane-folded tile; pe_ref: (TS, D) already in x.dtype.
    x = x_ref[...]
    pe = pe_ref[...]
    if b > 1:
        pe = jnp.tile(pe, (1, b))                      # (TS, B*D) — on-chip broadcast only
    y = x + pe

    if training and p > 0.0:
        si = pl.program_id(0)

        # Global linear index over the full (S, B, D) tensor, with the per-tile
        # constant part hoisted to a scalar: lin = row*(B*D) + col + si*ts*(B*D).
        rows = lax.broadcasted_iota(jnp.int32, y.shape, 0)
        cols = lax.broadcasted_iota(jnp.int32, y.shape, 1)
        off = si * jnp.int32(_wrap_i32(ts * bd))       # scalar
        lin = rows * jnp.int32(bd) + cols + off

        key = seed_ref[0].astype(jnp.uint32) * jnp.uint32(0x9E3779B1) + jnp.uint32(0x85EBCA77)
        bits = _mix32(pltpu.bitcast(lin, jnp.uint32) ^ key)

        # Signed compare on a free bitcast of the 32-bit hash:
        #   P(drop) = (thr + 2^31) / 2^32 = p   (p==0 -> never drop; p->1 clamped).
        thr = int(round(p * float(1 << 32))) - (1 << 31)
        thr = max(-(1 << 31), min(thr, (1 << 31) - 1))
        keep = pltpu.bitcast(bits, jnp.int32) >= jnp.int32(thr)

        scale = jnp.asarray(1.0 / (1.0 - p), dtype=y.dtype)
        zero = jnp.asarray(0.0, dtype=y.dtype)
        y = jnp.where(keep, y * scale, zero)

    o_ref[...] = y.astype(o_ref.dtype)


def _choose_tile_s(S, BD, D, itemsize):
    """Largest S-tile keeping double-buffered x/out/pe blocks inside ~12 MiB VMEM."""
    budget = 12 * 1024 * 1024                     # safe vs v5e 16 MiB / v7x 32 MiB scoped defaults
    bytes_per_row = 2 * itemsize * (2 * BD + D)   # 2x double-buffer: x + out (BD wide), pe (D wide)
    ts = budget // max(bytes_per_row, 1)
    ts = min(ts, 2048)
    if ts >= S:
        # Give the parallel axis >= 2 steps when there is enough work, so v7x's two
        # TensorCores both get a share.
        if S >= 16:
            half = ((pl.cdiv(S, 2) + 7) // 8) * 8
            if half < S:
                return half
        return S
    return max(8, (ts // 8) * 8)


def positional_encoding(x, pe, *, p=0.1, training=True, seed=0):
    """x: (S, B, D); pe: (max_len, D). Returns dropout(x + pe[:S]) like the module."""
    S, B, D = x.shape
    if training and p > 0.0:
        assert 0.0 < p < 1.0, "dropout p must be in [0, 1) for training"
    BD = B * D

    pe_slice = pe[:S, :].astype(x.dtype)          # pre-cast once; no per-tile convert
    x2 = x.reshape(S, BD)                         # free contiguous view: lane-dense last dim

    ts = _choose_tile_s(S, BD, D, x.dtype.itemsize)
    grid = (pl.cdiv(S, ts),)

    kernel = functools.partial(
        _pe_dropout_kernel,
        p=float(p), training=bool(training), ts=int(ts), b=int(B), bd=int(BD),
    )
    seed_arr = jnp.asarray([seed], dtype=jnp.int32)

    out2 = pl.pallas_call(
        kernel,
        out_shape=jax.ShapeDtypeStruct((S, BD), x.dtype),
        grid_spec=pltpu.PrefetchScalarGridSpec(
            num_scalar_prefetch=1,                 # seed lands in SMEM
            grid=grid,
            in_specs=[
                pl.BlockSpec((ts, BD), lambda i, seed: (i, 0)),   # x tile, contiguous rows
                pl.BlockSpec((ts, D), lambda i, seed: (i, 0)),    # pe tile, 1/B of x traffic
            ],
            out_specs=pl.BlockSpec((ts, BD), lambda i, seed: (i, 0)),
        ),
        compiler_params=pltpu.CompilerParams(
            dimension_semantics=("parallel",),     # v7x: shard S-tiles across both TCs
            vmem_limit_bytes=32 * 1024 * 1024,
        ),
    )(seed_arr, x2, pe_slice)

    return out2.reshape(S, B, D)


if __name__ == "__main__":
    key = jax.random.PRNGKey(0)
    S, B, D = 8, 2, 32          # seq_len, batch, d_model
    MAX_LEN = 64                # small stand-in for max_len=5000

    x = jax.random.normal(key, (S, B, D), dtype=jnp.float32)
    pe = make_positional_encoding_table(MAX_LEN, D, dtype=jnp.float32)
    ref_eval = np.asarray(x + pe[:S][:, None, :])

    # Eval mode (dropout = identity): exact match against plain JAX.
    out_eval = jax.block_until_ready(positional_encoding(x, pe, p=0.1, training=False))
    np.testing.assert_allclose(np.asarray(out_eval), ref_eval, rtol=1e-6, atol=1e-6)

    # Training mode (dropout p=0.1): kept elements equal (x + pe)/(1-p), dropped are 0,
    # drop rate is plausible, output is finite.
    p = 0.1
    out_train = jax.block_until_ready(positional_encoding(x, pe, p=p, training=True, seed=123))
    out_train_np = np.asarray(out_train)
    ref_scaled = ref_eval * np.float32(1.0 / (1.0 - p))

    assert out_train_np.shape == (S, B, D)
    assert np.isfinite(out_train_np).all()
    dropped = out_train_np == 0.0            # ref values are ~never exactly zero
    kept = ~dropped
    assert np.allclose(out_train_np[kept], ref_scaled[kept], rtol=1e-5, atol=1e-5)
    frac = dropped.mean()
    assert 0.01 <= frac <= 0.35, f"implausible drop fraction {frac}"

    print("KERNEL_OK")
</pallas_src>

<mosaic_0001>
module attributes {stable_mosaic.version = 11 : i64} {
  func.func @_pe_dropout_kernel(%arg0: i32, %arg1: memref<1xi32, #tpu.memory_space<smem>>, %arg2: memref<8x64xf32, #tpu.memory_space<vmem>>, %arg3: memref<8x32xf32, #tpu.memory_space<vmem>>, %arg4: memref<8x64xf32, #tpu.memory_space<vmem>>) attributes {dimension_semantics = [#tpu.dimension_semantics<parallel>], iteration_bounds = array<i64: 1>, scalar_prefetch = 1 : i64, scratch_operands = 0 : i64, tpu.core_type = #tpu.core_type<tc>, window_params = [{transform_indices = @transform_0, window_bounds = array<i64: 8, 64>}, {transform_indices = @transform_1, window_bounds = array<i64: 8, 32>}, {transform_indices = @transform_2, window_bounds = array<i64: 8, 64>}]} {
    %c0 = arith.constant 0 : index
    %c0_0 = arith.constant 0 : index
    %0 = vector.load %arg2[%c0, %c0_0] : memref<8x64xf32, #tpu.memory_space<vmem>>, vector<8x64xf32>
    %c0_1 = arith.constant 0 : index
    %c0_2 = arith.constant 0 : index
    %1 = vector.load %arg3[%c0_1, %c0_2] : memref<8x32xf32, #tpu.memory_space<vmem>>, vector<8x32xf32>
    %2 = tpu.concatenate %1, %1 in 1 : vector<8x32xf32>, vector<8x32xf32> -> vector<8x64xf32>
    %3 = arith.addf %0, %2 : vector<8x64xf32>
    %c0_3 = arith.constant 0 : index
    %c0_4 = arith.constant 0 : index
    %4 = vector.load %arg4[%c0_3, %c0_4] : memref<8x64xf32, #tpu.memory_space<vmem>>, vector<8x64xf32>
    tpu.vector_store %arg4[%c0_3, %c0_4], %3 {strides = array<i32>} : memref<8x64xf32, #tpu.memory_space<vmem>>, vector<8x64xf32>,
    return
  }
  func.func @transform_0(%arg0: i32, %arg1: memref<1xi32, #tpu.memory_space<smem>>) -> (i32, i32) {
    %c0_i32 = arith.constant 0 : i32
    %c0_i32_0 = arith.constant 0 : i32
    return %arg0, %c0_i32 : i32, i32
  }
  func.func @transform_1(%arg0: i32, %arg1: memref<1xi32, #tpu.memory_space<smem>>) -> (i32, i32) {
    %c0_i32 = arith.constant 0 : i32
    %c0_i32_0 = arith.constant 0 : i32
    return %arg0, %c0_i32 : i32, i32
  }
  func.func @transform_2(%arg0: i32, %arg1: memref<1xi32, #tpu.memory_space<smem>>) -> (i32, i32) {
    %c0_i32 = arith.constant 0 : i32
    %c0_i32_0 = arith.constant 0 : i32
    return %arg0, %c0_i32 : i32, i32
  }
}

</mosaic_0001>

<bundles_post_ra>
// kernel: tpu_custom_call.1
= control target key start
LH: loop header
LB: loop body
LE: loop exit
PB: predicated region body
PF: predicated region fallthrough
CT: control target
= control target key end

     0   :  { %9 = vsyncpa [#allocation5], 0  ;;  %s186_s0 = inlined_call_operand.<no memory space> [shape: s32[1], index: 0, kind: input, shape index: {}]   ;;  %s187_s1 = inlined_call_operand.hbm [shape: f32[8,64], index: 1, kind: input, shape index: {}]   ;;  %s188_s2 = inlined_call_operand.hbm [shape: f32[8,32], index: 2, kind: input, shape index: {}]   ;;  %s189_s3 = inlined_call_operand.hbm [shape: f32[8,64], index: 3, kind: output, shape index: {}]  }
   0x1   :  { %10 = vsyncpa [#allocation8], 0 }
   0x2   :  { %11 = vsyncpa [#allocation6], 0  ;;  %s17_s14 = sshll.u32 %s187_s1, 4  ;;  %s153_s15 = smov [#allocation4]   ;;  %s18_s14 = int_to_ptr.hbm [resolvable:$true] %s17_s14 }
   0x3   :  { %s19_s16 = sshll.u32 %s153_s15, 4  ;;  %s28_s18 = sshll.u32 %s188_s2, 4  ;;  %s20_s16 = int_to_ptr.vmem [resolvable:$true] %s19_s16  ;;  %s29_s18 = int_to_ptr.hbm [resolvable:$true] %s28_s18 }
   0x4   :  { %22 = dma.hbm_to_vmem [thread:$0]  %s18_s14, 128, %s20_s16, [#allocation5]  }
   0x5   :  { %s154_s19 = smov [#allocation7]  }
   0x6   :  { %s30_s20 = sshll.u32 %s154_s19, 4  ;;  %s31_s20 = int_to_ptr.vmem [resolvable:$true] %s30_s20 }
   0x7   :  { %33 = dma.hbm_to_vmem [thread:$0]  %s29_s18, 128, %s31_s20, [#allocation8]  }
   0x8   :  { %147 = dma.done.wait [#allocation5], 128  }
   0x9   :  { %148 = vsyncadd [#allocation5], 4294967168 }
   0xa   :  { %149 = dma.done.wait [#allocation8], 128  }
   0xb   :  { %150 = vsyncadd [#allocation8], 4294967168  ;;  %v43_v0 = vld [vmem:[#allocation7] sm:$0xff]  ;;  %s155_s1 = smov 32   ;;  %vm48_vm0 = vcmask 261120   ;;  %v42_v1 = vld [vmem:[#allocation4] sm:$0xff] }
   0xc   :  { %45 = vrot.lane.b32.xlu0 %v43_v0, %s155_s1  ;;  %s156_s21 = smov [#allocation9]   ;;  %s60_s2 = sshll.u32 %s189_s3, 4  ;;  %vm51_vm1 = vcmask 523264   ;;  %s61_s2 = int_to_ptr.hbm [resolvable:$true] %s60_s2 }
   0xd   :  { %s58_s22 = sshll.u32 %s156_s21, 4  ;;  %s59_s22 = int_to_ptr.vmem [resolvable:$true] %s58_s22 }
  0x7e   :  { %v46_v2 = vpop.permute.xlu0 %45 }
  0x7f   :  { %v49_v3 = vsel %vm48_vm0, %v43_v0, %v46_v2 }
  0x80   :  { %v50_v4 = vadd.f32 %v49_v3, %v42_v1 }
  0x82   :  { %52 = vst.msk [vmem:[#allocation9] sm:$0xff] %vm51_vm1, %v50_v4 }
  0x83   :  { %63 = dma.vmem_to_hbm [thread:$0]  %s59_s22, 128, %s61_s2, [#allocation6]  }
  0x84   :  { %151 = dma.done.wait [#allocation6], 128  }
  0x85   :  { %152 = vsyncadd [#allocation6], 4294967168 }
  0x86   :  { %68 = vsyncpa [#allocation5], 1 }
  0x87   :  { %69 = vsyncpa [#allocation8], 1 }
  0x88   :  { %70 = vsyncpa [#allocation6], 1 }

</bundles_post_ra>
